<compile_context>
chip_gen: v7x
topology: tpu7x:2x2x1
jax: 0.10.0
libtpu: 0.0.40
codegen_flags: <defaults>
</compile_context>

<pallas_src>
import jax
import jax.numpy as jnp
from jax.experimental import pallas as pl
from jax.experimental.pallas import tpu as pltpu


def _round_up(x, m):
    return (x + m - 1) // m * m


def _matmul_kernel(w_ref, x_ref, o_ref, acc_ref):
    k = pl.program_id(2)

    @pl.when(k == 0)
    def _():
        acc_ref[...] = jnp.zeros_like(acc_ref)

    acc_ref[...] += jnp.dot(
        w_ref[...], x_ref[...], preferred_element_type=jnp.float32
    )

    @pl.when(k == pl.num_programs(2) - 1)
    def _():
        o_ref[...] = acc_ref[...].astype(o_ref.dtype)


def _physical_vmem_bytes():
    try:
        return int(pltpu.get_tpu_info().vmem_capacity_bytes)
    except Exception:
        # Conservative fallback: v7x has 64 MiB per TensorCore (smallest of the gens).
        return 64 * 1024 * 1024


def linear_mm(weight, x, *, tm=512, tn=1024, tk=512, compute_dtype=None):
    """Pallas equivalent of `weight.mm(input)`: (M, K) @ (K, N) -> (M, N).

    compute_dtype=None          -> exact mode (operands used as-is, e.g. f32).
    compute_dtype=jnp.bfloat16  -> fast MXU path (f32 accumulation is kept).
    """
    M, K = weight.shape
    K2, N = x.shape
    assert K == K2, "inner dimensions must match"
    out_dtype = weight.dtype

    if compute_dtype is not None:
        # NOTE: if `weight` is a persistent parameter, cast it to bf16 once outside
        # the forward call to avoid a weight-sized HBM round trip per call.
        weight = weight.astype(compute_dtype)
        x = x.astype(compute_dtype)
    cdt = weight.dtype
    in_itemsize = jnp.dtype(cdt).itemsize
    out_itemsize = jnp.dtype(out_dtype).itemsize

    # Sublane packing: 8 rows/vreg for 4-byte dtypes, 16 for 2-byte, 32 for 1-byte.
    sub_pack = {4: 8, 2: 16, 1: 32}.get(in_itemsize, 8)

    # Clamp tiles to the (layout-aligned) problem size so small problems become a
    # single grid step: sublane dims -> multiple of the packing factor, lane dims ->
    # multiple of 128.  Defaults (512, 1024, 512) keep the MXU busy and minimize
    # operand re-reads while staying well under per-TC VMEM on every generation.
    tm = min(tm, _round_up(M, sub_pack))
    tn = min(tn, _round_up(N, 128))
    tk = min(tk, _round_up(K, 128))

    # Only K needs zero padding (exact for the reduction).  M/N ragged edges are
    # handled by Pallas: OOB output writes are dropped, so no host pad/slice needed.
    Kp = _round_up(K, tk)
    if Kp != K:
        weight = jnp.pad(weight, ((0, 0), (0, Kp - K)))
        x = jnp.pad(x, ((0, Kp - K), (0, 0)))

    grid = (pl.cdiv(M, tm), pl.cdiv(N, tn), Kp // tk)

    # VMEM budget: double-buffered input tiles + double-buffered output tile +
    # f32 accumulator scratch, with 2x headroom, floored at 32 MiB (v5e scoped
    # default is 16 MiB) and capped below physical per-TC VMEM (64 MiB on v7x).
    vmem_needed = (
        2 * (tm * tk + tk * tn) * in_itemsize
        + 2 * tm * tn * out_itemsize
        + tm * tn * 4
    )
    cap = min(int(_physical_vmem_bytes() * 0.9), 100 * 1024 * 1024)
    vmem_limit = int(min(max(2 * vmem_needed, 32 * 1024 * 1024), cap))

    cost = pl.CostEstimate(
        flops=2 * M * N * Kp,
        transcendentals=0,
        bytes_accessed=(M * Kp + Kp * N) * in_itemsize + M * N * out_itemsize,
    )

    return pl.pallas_call(
        _matmul_kernel,
        out_shape=jax.ShapeDtypeStruct((M, N), out_dtype),
        grid_spec=pltpu.PrefetchScalarGridSpec(
            num_scalar_prefetch=0,
            grid=grid,
            in_specs=[
                pl.BlockSpec((tm, tk), lambda i, j, k: (i, k)),  # weight tile
                pl.BlockSpec((tk, tn), lambda i, j, k: (k, j)),  # input tile
            ],
            out_specs=pl.BlockSpec((tm, tn), lambda i, j, k: (i, j)),
            scratch_shapes=[pltpu.VMEM((tm, tn), jnp.float32)],
        ),
        compiler_params=pltpu.CompilerParams(
            dimension_semantics=("parallel", "parallel", "arbitrary"),
            vmem_limit_bytes=vmem_limit,
        ),
        cost_estimate=cost,
    )(weight, x)


if __name__ == "__main__":
    # Deterministic parameter + input construction (module's __init__ stores an
    # arbitrary `weight` matrix; forward is weight.mm(input)).
    M, K, N = 64, 128, 256
    key = jax.random.PRNGKey(0)
    k_w, k_x = jax.random.split(key)
    weight = jax.random.normal(k_w, (M, K), dtype=jnp.float32)
    x = jax.random.normal(k_x, (K, N), dtype=jnp.float32)
    ref = weight @ x

    # Exact (f32) path.
    out = jax.block_until_ready(linear_mm(weight, x))
    assert out.shape == (M, N) and out.dtype == jnp.float32
    assert jnp.allclose(out, ref, atol=1e-4, rtol=1e-4), "mismatch vs reference (f32)"

    # bf16 MXU fast path (f32 accumulation), looser tolerance.
    out_bf16 = jax.block_until_ready(linear_mm(weight, x, compute_dtype=jnp.bfloat16))
    assert jnp.allclose(out_bf16, ref, atol=2e-1, rtol=2e-1), "mismatch (bf16 path)"

    # Non-tile-aligned shapes: exercises ragged M/N blocks + K zero-padding path.
    M2, K2, N2 = 100, 200, 300
    k2w, k2x = jax.random.split(jax.random.PRNGKey(1))
    w2 = jax.random.normal(k2w, (M2, K2), dtype=jnp.float32)
    x2 = jax.random.normal(k2x, (K2, N2), dtype=jnp.float32)
    out2 = jax.block_until_ready(linear_mm(w2, x2))
    ref2 = w2 @ x2
    assert out2.shape == (M2, N2)
    assert jnp.allclose(out2, ref2, atol=1e-3, rtol=1e-3), "mismatch (ragged path)"

    print("KERNEL_OK")
</pallas_src>

<mosaic_0001>
module attributes {stable_mosaic.version = 11 : i64} {
  func.func @_matmul_kernel(%arg0: i32, %arg1: i32, %arg2: i32, %arg3: memref<64x128xf32, #tpu.memory_space<vmem>>, %arg4: memref<128x256xf32, #tpu.memory_space<vmem>>, %arg5: memref<64x256xf32, #tpu.memory_space<vmem>>, %arg6: memref<64x256xf32, #tpu.memory_space<vmem>>) attributes {dimension_semantics = [#tpu.dimension_semantics<parallel>, #tpu.dimension_semantics<parallel>, #tpu.dimension_semantics<arbitrary>], iteration_bounds = array<i64: 1, 1, 1>, scalar_prefetch = 0 : i64, scratch_operands = 1 : i64, tpu.core_type = #tpu.core_type<tc>, window_params = [{transform_indices = @transform_0, window_bounds = array<i64: 64, 128>}, {transform_indices = @transform_1, window_bounds = array<i64: 128, 256>}, {transform_indices = @transform_2, window_bounds = array<i64: 64, 256>}]} {
    %c0_i32 = arith.constant 0 : i32
    %0 = arith.cmpi eq, %arg2, %c0_i32 : i32
    %1 = arith.extui %0 : i1 to i32
    %c0_i32_0 = arith.constant 0 : i32
    %2 = arith.cmpi ne, %1, %c0_i32_0 : i32
    scf.if %2 {
      %cst_10 = arith.constant 0.000000e+00 : f32
      %12 = vector.broadcast %cst_10 : f32 to vector<64x256xf32>
      %c0_11 = arith.constant 0 : index
      %c0_12 = arith.constant 0 : index
      %13 = vector.load %arg6[%c0_11, %c0_12] : memref<64x256xf32, #tpu.memory_space<vmem>>, vector<64x256xf32>
      tpu.vector_store %arg6[%c0_11, %c0_12], %12 {strides = array<i32>} : memref<64x256xf32, #tpu.memory_space<vmem>>, vector<64x256xf32>,
    } else {
    }
    %c0 = arith.constant 0 : index
    %c0_1 = arith.constant 0 : index
    %3 = vector.load %arg6[%c0, %c0_1] : memref<64x256xf32, #tpu.memory_space<vmem>>, vector<64x256xf32>
    %c0_2 = arith.constant 0 : index
    %c0_3 = arith.constant 0 : index
    %4 = vector.load %arg3[%c0_2, %c0_3] : memref<64x128xf32, #tpu.memory_space<vmem>>, vector<64x128xf32>
    %c0_4 = arith.constant 0 : index
    %c0_5 = arith.constant 0 : index
    %5 = vector.load %arg4[%c0_4, %c0_5] : memref<128x256xf32, #tpu.memory_space<vmem>>, vector<128x256xf32>
    %cst = arith.constant dense<0.000000e+00> : vector<64x256xf32>
    %6 = tpu.matmul %4, %5, %cst {dimension_numbers = #tpu.dot_dimension_numbers<[1], [0], [0], [1], [0, 0, 1, 1], [], []>} : vector<64x128xf32>, vector<128x256xf32>, vector<64x256xf32> -> vector<64x256xf32>
    %7 = arith.addf %3, %6 : vector<64x256xf32>
    %c0_6 = arith.constant 0 : index
    %c0_7 = arith.constant 0 : index
    %8 = vector.load %arg6[%c0_6, %c0_7] : memref<64x256xf32, #tpu.memory_space<vmem>>, vector<64x256xf32>
    tpu.vector_store %arg6[%c0_6, %c0_7], %7 {strides = array<i32>} : memref<64x256xf32, #tpu.memory_space<vmem>>, vector<64x256xf32>,
    %c0_i32_8 = arith.constant 0 : i32
    %9 = arith.cmpi eq, %arg2, %c0_i32_8 : i32
    %10 = arith.extui %9 : i1 to i32
    %c0_i32_9 = arith.constant 0 : i32
    %11 = arith.cmpi ne, %10, %c0_i32_9 : i32
    scf.if %11 {
      %c0_10 = arith.constant 0 : index
      %c0_11 = arith.constant 0 : index
      %12 = vector.load %arg6[%c0_10, %c0_11] : memref<64x256xf32, #tpu.memory_space<vmem>>, vector<64x256xf32>
      %c0_12 = arith.constant 0 : index
      %c0_13 = arith.constant 0 : index
      %13 = vector.load %arg5[%c0_12, %c0_13] : memref<64x256xf32, #tpu.memory_space<vmem>>, vector<64x256xf32>
      tpu.vector_store %arg5[%c0_12, %c0_13], %12 {strides = array<i32>} : memref<64x256xf32, #tpu.memory_space<vmem>>, vector<64x256xf32>,
    } else {
    }
    return
  }
  func.func @transform_0(%arg0: i32, %arg1: i32, %arg2: i32) -> (i32, i32) {
    %c0_i32 = arith.constant 0 : i32
    return %arg0, %arg2 : i32, i32
  }
  func.func @transform_1(%arg0: i32, %arg1: i32, %arg2: i32) -> (i32, i32) {
    %c0_i32 = arith.constant 0 : i32
    return %arg2, %arg1 : i32, i32
  }
  func.func @transform_2(%arg0: i32, %arg1: i32, %arg2: i32) -> (i32, i32) {
    %c0_i32 = arith.constant 0 : i32
    return %arg0, %arg1 : i32, i32
  }
}

</mosaic_0001>

<bundles_post_ra>
// kernel: tpu_custom_call.1
= control target key start
LH: loop header
LB: loop body
LE: loop exit
PB: predicated region body
PF: predicated region fallthrough
CT: control target
= control target key end

     0   :  { %7 = vsyncpa [#allocation4], 0  ;;  %s515_s0 = inlined_call_operand.hbm [shape: f32[64,128], index: 0, kind: input, shape index: {}]   ;;  %s516_s1 = inlined_call_operand.hbm [shape: f32[128,256], index: 1, kind: input, shape index: {}]   ;;  %s517_s2 = inlined_call_operand.hbm [shape: f32[64,256], index: 2, kind: output, shape index: {}]  }
   0x1   :  { %8 = vsyncpa [#allocation7], 0 }
   0x2   :  { %9 = vsyncpa [#allocation5], 0  ;;  %s442_s9 = smov [#allocation3]   ;;  %s370_s13 = scalar_lea.hbm %s515_s0, 1024 }
   0x3   :  { %s15_s10 = sshll.u32 %s442_s9, 4  ;;  %p371_p0 = scmp.ne.s32.totalorder %s515_s0, %s370_s13  ;;  %s16_s10 = int_to_ptr.vmem [resolvable:$true] %s15_s10 }
   0x4   :  { %p374_p1 = scmp.lt.u32.totalorder %s370_s13, %s515_s0 }
   0x6   :  { %p376_p2 = pnand %p374_p1, %p371_p0 }
   0x8   :  { %379 = shalt.err (!%p376_p2)
}
   0x9   :  { %s380_s18 = scalar_lea.vmem %s16_s10, 1024  ;;  %p385_p4 = scmp.lt.s32.totalorder %s16_s10, %s16_s10 }
   0xa   :  { %p381_p3 = scmp.ne.s32.totalorder %s16_s10, %s380_s18  ;;  %p386_p5 = scmp.lt.s32.totalorder %s380_s18, %s380_s18 }
   0xc   :  { %p387_p6 = por %p386_p5, %p385_p4 }
   0xe   :  { %p388_p7 = pnand %p387_p6, %p381_p3 }
  0x10   :  { %391 = shalt.err (!%p388_p7)
}
  0x11   :  { %s443_s19 = smov 128   ;;  %s444_s20 = smov 8  }
  0x12   :  { %21 = dma.hbm_to_vmem [thread:$0]  %s515_s0, 1024, %s16_s10, [#allocation4], %s443_s19, %s443_s19, %s444_s20  }
  0x13   :  { %s445_s23 = smov [#allocation6]   ;;  %s392_s27 = scalar_lea.hbm %s516_s1, 4096 }
  0x14   :  { %s27_s24 = sshll.u32 %s445_s23, 4  ;;  %p393_p8 = scmp.ne.s32.totalorder %s516_s1, %s392_s27  ;;  %s28_s24 = int_to_ptr.vmem [resolvable:$true] %s27_s24 }
  0x15   :  { %p396_p9 = scmp.lt.u32.totalorder %s392_s27, %s516_s1 }
  0x17   :  { %p398_p10 = pnand %p396_p9, %p393_p8 }
  0x19   :  { %401 = shalt.err (!%p398_p10)
}
  0x1a   :  { %s402_s4 = scalar_lea.vmem %s28_s24, 4096  ;;  %p407_p12 = scmp.lt.s32.totalorder %s28_s24, %s28_s24 }
  0x1b   :  { %p403_p11 = scmp.ne.s32.totalorder %s28_s24, %s402_s4  ;;  %p408_p13 = scmp.lt.s32.totalorder %s402_s4, %s402_s4 }
  0x1d   :  { %p409_p0 = por %p408_p13, %p407_p12 }
  0x1f   :  { %p410_p1 = pnand %p409_p0, %p403_p11 }
  0x21   :  { %413 = shalt.err (!%p410_p1)
}
  0x22   :  { %s446_s0 = smov 256   ;;  %s447_s5 = smov 16  }
  0x23   :  { %33 = dma.hbm_to_vmem [thread:$0]  %s516_s1, 4096, %s28_s24, [#allocation7], %s446_s0, %s446_s0, %s447_s5  }
  0x24   :  { %436 = dma.done.wait [#allocation4], 1024  }
  0x25   :  { %437 = vsyncadd [#allocation4], 4294966272 }
  0x26   :  { %438 = dma.done.wait [#allocation7], 4096  }
  0x27   :  { %439 = vsyncadd [#allocation7], 4294963200  ;;  %v448_v0 = vmov 0.0   ;;  %v85_v1 = vld [vmem:[#allocation6 + $0x8] sm:$0xff]  ;;  %v87_v2 = vld [vmem:[#allocation6 + $0x18] sm:$0xff]  ;;  %s449_s1 = smov [#allocation8]  }
  0x28   :  { %180 = vmatprep.mubr.f32.mxu0 %v448_v0  ;;  %204 = vmatprep.mubr.f32.mxu1 %v448_v0  ;;  %v84_v3 = vld [vmem:[#allocation6] sm:$0xff]  ;;  %v314_v4 = vpack.c.bf16 %v87_v2, %v85_v1  ;;  %v86_v5 = vld [vmem:[#allocation6 + $0x10] sm:$0xff]  ;;  %v89_v6 = vld [vmem:[#allocation6 + $0x28] sm:$0xff]  ;;  %s301_s8 = sshll.u32 %s449_s1, 4  ;;  %s302_s8 = int_to_ptr.vmem [resolvable:$true] %s301_s8 }
  0x29   :  { %v91_v7 = vld [vmem:[#allocation6 + $0x38] sm:$0xff]  ;;  %v316_v8 = vpack.c.bf16 %v86_v5, %v84_v3  ;;  %v88_v10 = vld [vmem:[#allocation6 + $0x20] sm:$0xff]  ;;  %v90_v11 = vld [vmem:[#allocation6 + $0x30] sm:$0xff]  ;;  %s414_s9 = scalar_lea.vmem %s302_s8, 2048  ;;  %p419_p3 = scmp.lt.s32.totalorder %s302_s8, %s302_s8 }
  0x2a   :  { %v318_v9 = vpack.c.bf16 %v91_v7, %v89_v6  ;;  %v93_v12 = vld [vmem:[#allocation6 + $0x48] sm:$0xff]  ;;  %315 = vmatprep.subr.bf16.mxu0 %v314_v4  ;;  %346 = vmatprep.subr.bf16.mxu1 %v314_v4  ;;  %v95_v13 = vld [vmem:[#allocation6 + $0x58] sm:$0xff]  ;;  %v320_v14 = vpack.c.bf16 %v90_v11, %v88_v10  ;;  %v92_v16 = vld [vmem:[#allocation6 + $0x40] sm:$0xff]  ;;  %p415_p2 = scmp.ne.s32.totalorder %s302_s8, %s414_s9  ;;  %p420_p4 = scmp.lt.s32.totalorder %s414_s9, %s414_s9 }
  0x2b   :  { %317 = vmatpush1.bf16.msra.mxu0 %v316_v8  ;;  %354 = vmatpush1.bf16.msra.mxu1 %v316_v8  ;;  %v322_v15 = vpack.c.bf16 %v95_v13, %v93_v12  ;;  %v94_v17 = vld [vmem:[#allocation6 + $0x50] sm:$0xff]  ;;  %v97_v18 = vld [vmem:[#allocation6 + $0x68] sm:$0xff]  ;;  %v99_v19 = vld [vmem:[#allocation6 + $0x78] sm:$0xff] }
  0x2c   :  { %319 = vmatprep.subr.bf16.mxu0 %v318_v9  ;;  %347 = vmatprep.subr.bf16.mxu1 %v318_v9  ;;  %v324_v20 = vpack.c.bf16 %v94_v17, %v92_v16  ;;  %v326_v21 = vpack.c.bf16 %v99_v19, %v97_v18  ;;  %v96_v22 = vld [vmem:[#allocation6 + $0x60] sm:$0xff]  ;;  %v98_v23 = vld [vmem:[#allocation6 + $0x70] sm:$0xff]  ;;  %v101_v24 = vld [vmem:[#allocation6 + $0x88] sm:$0xff]  ;;  %p421_p5 = por %p420_p4, %p419_p3 }
  0x2d   :  { %v103_v25 = vld [vmem:[#allocation6 + $0x98] sm:$0xff]  ;;  %v328_v26 = vpack.c.bf16 %v98_v23, %v96_v22  ;;  %v100_v28 = vld [vmem:[#allocation6 + $0x80] sm:$0xff]  ;;  %v102_v29 = vld [vmem:[#allocation6 + $0x90] sm:$0xff] }
  0x2e   :  { %v330_v27 = vpack.c.bf16 %v103_v25, %v101_v24  ;;  %v105_v30 = vld [vmem:[#allocation6 + $0xa8] sm:$0xff]  ;;  %v107_v31 = vld [vmem:[#allocation6 + $0xb8] sm:$0xff]  ;;  %v332_v32 = vpack.c.bf16 %v102_v29, %v100_v28  ;;  %v104_v34 = vld [vmem:[#allocation6 + $0xa0] sm:$0xff]  ;;  %p422_p6 = pnand %p421_p5, %p415_p2 }
  0x2f   :  { %321 = vmatpush1.bf16.msra.mxu0 %v320_v14  ;;  %355 = vmatpush1.bf16.msra.mxu1 %v320_v14  ;;  %v334_v33 = vpack.c.bf16 %v107_v31, %v105_v30  ;;  %v106_v35 = vld [vmem:[#allocation6 + $0xb0] sm:$0xff]  ;;  %v109_v36 = vld [vmem:[#allocation6 + $0xc8] sm:$0xff]  ;;  %v111_v37 = vld [vmem:[#allocation6 + $0xd8] sm:$0xff] }
  0x30   :  { %323 = vmatprep.subr.bf16.mxu0 %v322_v15  ;;  %348 = vmatprep.subr.bf16.mxu1 %v322_v15  ;;  %v336_v38 = vpack.c.bf16 %v106_v35, %v104_v34  ;;  %v338_v39 = vpack.c.bf16 %v111_v37, %v109_v36  ;;  %v108_v40 = vld [vmem:[#allocation6 + $0xc0] sm:$0xff]  ;;  %v110_v41 = vld [vmem:[#allocation6 + $0xd0] sm:$0xff]  ;;  %v113_v42 = vld [vmem:[#allocation6 + $0xe8] sm:$0xff] }
  0x31   :  { %v115_v43 = vld [vmem:[#allocation6 + $0xf8] sm:$0xff]  ;;  %v340_v44 = vpack.c.bf16 %v110_v41, %v108_v40  ;;  %v112_v46 = vld [vmem:[#allocation6 + $0xe0] sm:$0xff]  ;;  %v114_v47 = vld [vmem:[#allocation6 + $0xf0] sm:$0xff] }
  0x32   :  { %v342_v45 = vpack.c.bf16 %v115_v43, %v113_v42  ;;  %v344_v48 = vpack.c.bf16 %v114_v47, %v112_v46  ;;  %v76_v49 = vld [vmem:[#allocation3] sm:$0xff]  ;;  %v77_v51 = vld [vmem:[#allocation3 + $0x8] sm:$0xff]  ;;  %v78_v53 = vld [vmem:[#allocation3 + $0x10] sm:$0xff] }
  0x33   :  { %325 = vmatpush1.bf16.msra.mxu0 %v324_v20  ;;  %356 = vmatpush1.bf16.msra.mxu1 %v324_v20  ;;  %v80_v50 = vld [vmem:[#allocation3 + $0x20] sm:$0xff]  ;;  %v81_v52 = vld [vmem:[#allocation3 + $0x28] sm:$0xff]  ;;  %v82_v54 = vld [vmem:[#allocation3 + $0x30] sm:$0xff] }
  0x34   :  { %327 = vmatprep.subr.bf16.mxu0 %v326_v21  ;;  %349 = vmatprep.subr.bf16.mxu1 %v326_v21  ;;  %v79_v55 = vld [vmem:[#allocation3 + $0x18] sm:$0xff] }
  0x35   :  { %v83_v56 = vld [vmem:[#allocation3 + $0x38] sm:$0xff] }
  0x37   :  { %329 = vmatpush1.bf16.msra.mxu0 %v328_v26  ;;  %357 = vmatpush1.bf16.msra.mxu1 %v328_v26 }
  0x38   :  { %331 = vmatprep.subr.bf16.mxu0 %v330_v27  ;;  %350 = vmatprep.subr.bf16.mxu1 %v330_v27 }
  0x3b   :  { %333 = vmatpush1.bf16.msra.mxu0 %v332_v32  ;;  %358 = vmatpush1.bf16.msra.mxu1 %v332_v32 }
  0x3c   :  { %335 = vmatprep.subr.bf16.mxu0 %v334_v33  ;;  %351 = vmatprep.subr.bf16.mxu1 %v334_v33 }
  0x3f   :  { %337 = vmatpush1.bf16.msra.mxu0 %v336_v38  ;;  %359 = vmatpush1.bf16.msra.mxu1 %v336_v38 }
  0x40   :  { %339 = vmatprep.subr.bf16.mxu0 %v338_v39  ;;  %352 = vmatprep.subr.bf16.mxu1 %v338_v39 }
  0x43   :  { %341 = vmatpush1.bf16.msra.mxu0 %v340_v44  ;;  %360 = vmatpush1.bf16.msra.mxu1 %v340_v44 }
  0x44   :  { %343 = vmatprep.subr.bf16.mxu0 %v342_v45  ;;  %353 = vmatprep.subr.bf16.mxu1 %v342_v45 }
  0x47   :  { %345 = vmatpush1.bf16.msra.mxu0 %v344_v48  ;;  %361 = vmatpush1.bf16.msra.mxu1 %v344_v48 }
  0x4a   :  { %181 = vmatmul.mubr.f32.vlgmr.msra.gmra.mrb[0].mxu0 %v76_v49  ;;  %205 = vmatmul.mubr.f32.vlgmr.msra.gmra.mrb[0].mxu1 %v80_v50 }
  0x4b   :  { %186 = vmatprep.mubr.f32.mxu0 %v448_v0  ;;  %210 = vmatprep.mubr.f32.mxu1 %v448_v0 }
  0x4e   :  { %187 = vmatmul.mubr.f32.gmra.mrb[2].mxu0 %v77_v51  ;;  %211 = vmatmul.mubr.f32.gmra.mrb[2].mxu1 %v81_v52 }
  0x4f   :  { %192 = vmatprep.mubr.f32.mxu0 %v448_v0  ;;  %216 = vmatprep.mubr.f32.mxu1 %v448_v0 }
  0x52   :  { %193 = vmatmul.mubr.f32.gmra.mrb[4].mxu0 %v78_v53  ;;  %217 = vmatmul.mubr.f32.gmra.mrb[4].mxu1 %v82_v54 }
  0x53   :  { %198 = vmatprep.mubr.f32.mxu0 %v448_v0  ;;  %222 = vmatprep.mubr.f32.mxu1 %v448_v0 }
  0x56   :  { %199 = vmatmul.mubr.f32.gmra.mrb[6].mxu0 %v79_v55  ;;  %223 = vmatmul.mubr.f32.gmra.mrb[6].mxu1 %v83_v56 }
 0x11d   :  { %v182_v57 = vpop.f32.mrb[0].mxu0  ;;  %v206_v58 = vpop.f32.mrb[0].mxu1 }
 0x11e   :  { %280 = vst [vmem:[#allocation8] sm:$0xff] %v182_v57  ;;  %288 = vst [vmem:[#allocation8 + $0x40] sm:$0xff] %v206_v58  ;;  %v184_v59 = vpop.f32.mrb[1].mxu0  ;;  %v208_v60 = vpop.f32.mrb[1].mxu1 }
 0x11f   :  { %281 = vst [vmem:[#allocation8 + $0x8] sm:$0xff] %v184_v59  ;;  %289 = vst [vmem:[#allocation8 + $0x48] sm:$0xff] %v208_v60 }
 0x121   :  { %v188_v61 = vpop.f32.mrb[2].mxu0  ;;  %v212_v62 = vpop.f32.mrb[2].mxu1 }
 0x122   :  { %282 = vst [vmem:[#allocation8 + $0x10] sm:$0xff] %v188_v61  ;;  %290 = vst [vmem:[#allocation8 + $0x50] sm:$0xff] %v212_v62  ;;  %v190_v63 = vpop.f32.mrb[3].mxu0  ;;  %v214_v1 = vpop.f32.mrb[3].mxu1 }
 0x123   :  { %283 = vst [vmem:[#allocation8 + $0x18] sm:$0xff] %v190_v63  ;;  %291 = vst [vmem:[#allocation8 + $0x58] sm:$0xff] %v214_v1 }
 0x125   :  { %v194_v0 = vpop.f32.mrb[4].mxu0  ;;  %v218_v2 = vpop.f32.mrb[4].mxu1 }
 0x126   :  { %284 = vst [vmem:[#allocation8 + $0x20] sm:$0xff] %v194_v0  ;;  %292 = vst [vmem:[#allocation8 + $0x60] sm:$0xff] %v218_v2  ;;  %v196_v3 = vpop.f32.mrb[5].mxu0  ;;  %v220_v4 = vpop.f32.mrb[5].mxu1 }
 0x127   :  { %285 = vst [vmem:[#allocation8 + $0x28] sm:$0xff] %v196_v3  ;;  %293 = vst [vmem:[#allocation8 + $0x68] sm:$0xff] %v220_v4 }
 0x129   :  { %v200_v5 = vpop.f32.mrb[6].mxu0  ;;  %v224_v6 = vpop.f32.mrb[6].mxu1 }
 0x12a   :  { %286 = vst [vmem:[#allocation8 + $0x30] sm:$0xff] %v200_v5  ;;  %294 = vst [vmem:[#allocation8 + $0x70] sm:$0xff] %v224_v6  ;;  %v202_v7 = vpop.f32.mrb[7].mxu0  ;;  %v226_v8 = vpop.f32.mrb[7].mxu1 }
 0x12b   :  { %287 = vst [vmem:[#allocation8 + $0x38] sm:$0xff] %v202_v7  ;;  %295 = vst [vmem:[#allocation8 + $0x78] sm:$0xff] %v226_v8 }
 0x12c   :  { %425 = shalt.err (!%p422_p6)
}
 0x12d   :  { %s426_s12 = scalar_lea.hbm %s517_s2, 2048 }
 0x12e   :  { %p427_p7 = scmp.ne.s32.totalorder %s517_s2, %s426_s12  ;;  %p430_p8 = scmp.lt.u32.totalorder %s426_s12, %s517_s2 }
 0x130   :  { %p432_p9 = pnand %p430_p8, %p427_p7 }
 0x132   :  { %435 = shalt.err (!%p432_p9)
}
 0x133   :  { %307 = dma.vmem_to_hbm [thread:$0]  %s302_s8, 2048, %s517_s2, [#allocation5], %s446_s0, %s446_s0, %s447_s5  }
 0x134   :  { %440 = dma.done.wait [#allocation5], 2048  }
 0x135   :  { %441 = vsyncadd [#allocation5], 4294965248 }
 0x136   :  { %311 = vsyncpa [#allocation4], 1 }
 0x137   :  { %312 = vsyncpa [#allocation7], 1 }
 0x138   :  { %313 = vsyncpa [#allocation5], 1 }

</bundles_post_ra>
